<compile_context>
chip_gen: v6e
topology: v6e:2x2x1
jax: 0.10.0
libtpu: 0.0.40
codegen_flags: <defaults>
</compile_context>

<pallas_src>
import functools

import jax
import jax.numpy as jnp
from jax.experimental import pallas as pl
from jax.experimental.pallas import tpu as pltpu

EPS = 1e-5
NEG_SLOPE = 0.2


def _round_up(x, m):
    return (x + m - 1) // m * m


def _largest_divisor_tile(total, cap):
    """Largest multiple-of-8 divisor of `total` (itself a multiple of 8) <= cap."""
    d = min(total, cap)
    d -= d % 8
    while d > 8 and total % d != 0:
        d -= 8
    return max(d, 8)


# --------------------------------------------------------------------------- #
# Pass 1: per-image 4-tap conv (space-to-depth form) + centered BN partials
# --------------------------------------------------------------------------- #
def conv_stats_kernel(x_ref, w_ref, mask_ref, y_ref, sum_ref, css_ref, *,
                      ws, inv_count):
    # x_ref:    (1, R, C4)        bf16 flattened (Hs, Ws) space-to-depth rows (one image)
    # w_ref:    (4, C4, C_pad)    bf16 per-(dy,dx)-tap weights, VMEM resident
    # mask_ref: (M_pad, 1)        f32  1.0 on valid output positions, 0.0 on junk
    # y_ref:    (1, M_pad, C_pad) bf16 raw conv output (flattened (Ho, Ws) rows)
    # sum_ref:  (1, 1, C_pad)     f32  per-image sum over valid positions
    # css_ref:  (1, 1, C_pad)     f32  per-image centered sum of squares
    m_pad = y_ref.shape[1]
    x = x_ref[0]                                     # (R, C4) aligned full-block load
    acc = None
    for dy in (0, 1):
        for dx in (0, 1):
            # Full-rows MXU product for this tap, then shift rows by the tap
            # offset (start = dy*Ws + dx) when accumulating.  Shifting the f32
            # product value keeps every Ref access block-aligned.
            prod = jnp.dot(x, w_ref[2 * dy + dx],
                           preferred_element_type=jnp.float32)   # (R, C_pad)
            start = dy * ws + dx
            tap = prod[start:start + m_pad, :]
            acc = tap if acc is None else acc + tap
    y_ref[0] = acc.astype(y_ref.dtype)               # bf16 writeback (halves HBM)
    mask = mask_ref[...]                             # (M_pad, 1)
    s = jnp.sum(acc * mask, axis=0, keepdims=True)   # (1, C_pad)
    mean_img = s * inv_count
    d = (acc - mean_img) * mask
    sum_ref[0] = s
    css_ref[0] = jnp.sum(d * d, axis=0, keepdims=True)


# --------------------------------------------------------------------------- #
# Pass 2: fused BN affine (precomputed scale/shift) + LeakyReLU(0.2)
# --------------------------------------------------------------------------- #
def bn_lrelu_kernel(y_ref, scale_ref, shift_ref, o_ref):
    yb = y_ref[...].astype(jnp.float32) * scale_ref[...] + shift_ref[...]
    o_ref[...] = jnp.where(yb > 0, yb, NEG_SLOPE * yb)


@functools.partial(jax.jit,
                   static_argnames=("kernel_size", "stride", "padding",
                                    "channels_last"))
def encoder_block(x, weight, gamma, beta, kernel_size=4, stride=2, padding=1,
                  channels_last=False):
    # x: (N, C_in, H, W); weight: (C_out, C_in, 4, 4) OIHW (PyTorch layout)
    n, c_in, h, w = x.shape
    c_out = weight.shape[0]
    if (kernel_size, stride, padding) != (4, 2, 1):
        raise NotImplementedError("specialized for the pix2pix encoder conv")
    assert h % 2 == 0 and w % 2 == 0, "H, W must be even for the s2d rewrite"

    ho, wo = h // 2, w // 2
    hs, ws = ho + 1, wo + 1            # space-to-depth dims of the padded input
    c4 = 4 * c_in                      # s2d channel count (= conv K per tap)
    c_pad = _round_up(c_out, 128)      # lane-dense output channels
    m_img = ho * ws                    # flattened (Ho, Ws) output rows per image
    m_pad = _round_up(m_img, 8)
    r_rows = _round_up(max(hs * ws, ws + 1 + m_pad), 8)
    cnt = ho * wo                      # valid output positions per image

    # -- input prep (cheap, O(|x|), all bf16): NCHW -> padded NHWC -> s2d(2) -> flatten
    xb = x.astype(jnp.bfloat16).transpose(0, 2, 3, 1)                    # (N,H,W,Ci)
    xp = jnp.pad(xb, ((0, 0), (1, 1), (1, 1), (0, 0)))                   # (N,H+2,W+2,Ci)
    xs = xp.reshape(n, hs, 2, ws, 2, c_in).transpose(0, 1, 3, 2, 4, 5)   # (N,Hs,Ws,2,2,Ci)
    xs = xs.reshape(n, hs * ws, c4)
    xs = jnp.pad(xs, ((0, 0), (0, r_rows - hs * ws), (0, 0)))            # (N,R,C4)

    # -- weights OIHW -> (tap=(dy,dx), (py,px,cin), cout), padded to C_pad, bf16
    w2 = weight.astype(jnp.bfloat16).reshape(c_out, c_in, 2, 2, 2, 2)    # (o,c,dy,py,dx,px)
    w2 = w2.transpose(2, 4, 3, 5, 1, 0).reshape(4, c4, c_out)
    w2 = jnp.pad(w2, ((0, 0), (0, 0), (0, c_pad - c_out)))

    # -- validity mask over flattened (Ho, Ws) positions (Ws carries one junk col)
    p_idx = jnp.arange(m_pad)
    mask = ((p_idx % ws < wo) & (p_idx < m_img)).astype(jnp.float32)
    mask = mask.reshape(m_pad, 1)

    est = (2 * (r_rows * c4 * 2 + 4 * c4 * c_pad * 2 + m_pad * 4
                + m_pad * c_pad * 2 + 2 * c_pad * 4)
           + (m_pad + r_rows) * c_pad * 4)
    vmem1 = int(min(max(4 * est, 32 * 2 ** 20), 64 * 2 ** 20))

    kern1 = functools.partial(conv_stats_kernel, ws=ws, inv_count=1.0 / cnt)
    y, s_out, css_out = pl.pallas_call(
        kern1,
        out_shape=(
            jax.ShapeDtypeStruct((n, m_pad, c_pad), jnp.bfloat16),
            jax.ShapeDtypeStruct((n, 1, c_pad), jnp.float32),
            jax.ShapeDtypeStruct((n, 1, c_pad), jnp.float32),
        ),
        grid=(n,),
        in_specs=[
            pl.BlockSpec((1, r_rows, c4), lambda i: (i, 0, 0)),
            pl.BlockSpec((4, c4, c_pad), lambda i: (0, 0, 0)),    # resident weights
            pl.BlockSpec((m_pad, 1), lambda i: (0, 0)),           # resident mask
        ],
        out_specs=(
            pl.BlockSpec((1, m_pad, c_pad), lambda i: (i, 0, 0)),
            pl.BlockSpec((1, 1, c_pad), lambda i: (i, 0, 0)),
            pl.BlockSpec((1, 1, c_pad), lambda i: (i, 0, 0)),
        ),
        compiler_params=pltpu.CompilerParams(
            dimension_semantics=("parallel",),       # batch axis -> both v7x TCs
            vmem_limit_bytes=vmem1),
    )(xs, w2, mask)

    # -- tiny O(C) reduction: Chan-combine per-image centered stats -> scale/shift
    s_img = s_out[:, 0, :]                           # (N, C_pad)
    css_img = css_out[:, 0, :]
    total = jnp.float32(n * cnt)
    mean = jnp.sum(s_img, axis=0) / total
    mean_img = s_img / jnp.float32(cnt)
    var = (jnp.sum(css_img, axis=0)
           + jnp.float32(cnt) * jnp.sum((mean_img - mean) ** 2, axis=0)) / total
    gamma_p = jnp.pad(gamma.astype(jnp.float32), (0, c_pad - c_out))
    beta_p = jnp.pad(beta.astype(jnp.float32), (0, c_pad - c_out))
    inv_std = jax.lax.rsqrt(var + EPS)
    scale = (gamma_p * inv_std).reshape(1, c_pad)
    shift = (beta_p - mean * gamma_p * inv_std).reshape(1, c_pad)

    # -- pass 2: large lane-dense blocks over the flattened bf16 y
    total_rows = n * m_pad
    tm2 = _largest_divisor_tile(total_rows, 2048)
    vmem2 = int(min(max(8 * tm2 * c_pad * 4, 32 * 2 ** 20), 64 * 2 ** 20))
    out = pl.pallas_call(
        bn_lrelu_kernel,
        out_shape=jax.ShapeDtypeStruct((total_rows, c_pad), jnp.float32),
        grid=(total_rows // tm2,),
        in_specs=[
            pl.BlockSpec((tm2, c_pad), lambda i: (i, 0)),
            pl.BlockSpec((1, c_pad), lambda i: (0, 0)),
            pl.BlockSpec((1, c_pad), lambda i: (0, 0)),
        ],
        out_specs=pl.BlockSpec((tm2, c_pad), lambda i: (i, 0)),
        compiler_params=pltpu.CompilerParams(
            dimension_semantics=("parallel",),
            vmem_limit_bytes=vmem2),
    )(y.reshape(total_rows, c_pad), scale, shift)
    # NOTE: with a bf16 output this pass could alias y in place
    # (input_output_aliases={0: 0}); kept f32 to preserve the module's dtype.

    out = out.reshape(n, m_pad, c_pad)[:, :m_img, :]
    out = out.reshape(n, ho, ws, c_pad)[:, :, :wo, :c_out]     # NHWC, junk col dropped
    if channels_last:
        return out
    return out.transpose(0, 3, 1, 2)                           # NCHW (module contract)


def encoder_block_ref(x, weight, gamma, beta):
    # Pure-JAX f32 reference matching PyTorch forward (training-mode BN).
    y = jax.lax.conv_general_dilated(
        x, weight, window_strides=(2, 2), padding=((1, 1), (1, 1)),
        dimension_numbers=("NCHW", "OIHW", "NCHW"),
    )
    mean = y.mean(axis=(0, 2, 3), keepdims=True)
    var = ((y - mean) ** 2).mean(axis=(0, 2, 3), keepdims=True)
    yn = (y - mean) / jnp.sqrt(var + EPS)
    yb = yn * gamma.reshape(1, -1, 1, 1) + beta.reshape(1, -1, 1, 1)
    return jnp.where(yb > 0, yb, NEG_SLOPE * yb)


if __name__ == "__main__":
    key = jax.random.PRNGKey(0)
    k_x, k_w, k_g, k_b = jax.random.split(key, 4)

    N, C_IN, H, W = 2, 4, 16, 16
    C_OUT, KSIZE = 8, 4

    x = jax.random.normal(k_x, (N, C_IN, H, W), dtype=jnp.float32)
    weight = 0.1 * jax.random.normal(k_w, (C_OUT, C_IN, KSIZE, KSIZE),
                                     dtype=jnp.float32)
    gamma = 1.0 + 0.1 * jax.random.normal(k_g, (C_OUT,), dtype=jnp.float32)
    beta = 0.1 * jax.random.normal(k_b, (C_OUT,), dtype=jnp.float32)

    out = jax.block_until_ready(encoder_block(x, weight, gamma, beta))
    ref = jax.block_until_ready(encoder_block_ref(x, weight, gamma, beta))

    assert out.shape == (N, C_OUT, H // 2, W // 2), out.shape
    # bf16 MXU operands + bf16 y writeback vs f32 reference -> few e-3 abs error.
    max_err = float(jnp.abs(out - ref).max())
    assert jnp.allclose(out, ref, atol=3e-2, rtol=3e-2), max_err

    print("KERNEL_OK")
</pallas_src>

<mosaic_0001>
module attributes {stable_mosaic.version = 11 : i64} {
  func.func @conv_stats_kernel(%arg0: i32, %arg1: memref<1x88x16xbf16, #tpu.memory_space<vmem>>, %arg2: memref<4x16x128xbf16, #tpu.memory_space<vmem>>, %arg3: memref<72x1xf32, #tpu.memory_space<vmem>>, %arg4: memref<1x72x128xbf16, #tpu.memory_space<vmem>>, %arg5: memref<1x1x128xf32, #tpu.memory_space<vmem>>, %arg6: memref<1x1x128xf32, #tpu.memory_space<vmem>>) attributes {dimension_semantics = [#tpu.dimension_semantics<parallel>], iteration_bounds = array<i64: 2>, scalar_prefetch = 0 : i64, scratch_operands = 0 : i64, tpu.core_type = #tpu.core_type<tc>, window_params = [{transform_indices = @transform_0, window_bounds = array<i64: 1, 88, 16>}, {pipeline_mode = #tpu.pipeline_mode<synchronous>, transform_indices = @transform_1, window_bounds = array<i64: 4, 16, 128>}, {pipeline_mode = #tpu.pipeline_mode<synchronous>, transform_indices = @transform_2, window_bounds = array<i64: 72, 1>}, {transform_indices = @transform_3, window_bounds = array<i64: 1, 72, 128>}, {transform_indices = @transform_4, window_bounds = array<i64: 1, 1, 128>}, {transform_indices = @transform_5, window_bounds = array<i64: 1, 1, 128>}]} {
    %c0 = arith.constant 0 : index
    %c0_0 = arith.constant 0 : index
    %c0_1 = arith.constant 0 : index
    %0 = vector.load %arg1[%c0, %c0_0, %c0_1] : memref<1x88x16xbf16, #tpu.memory_space<vmem>>, vector<1x88x16xbf16>
    %1 = vector.shape_cast %0 : vector<1x88x16xbf16> to vector<88x16xbf16>
    %c0_2 = arith.constant 0 : index
    %c0_3 = arith.constant 0 : index
    %c0_4 = arith.constant 0 : index
    %2 = vector.load %arg2[%c0_2, %c0_3, %c0_4] : memref<4x16x128xbf16, #tpu.memory_space<vmem>>, vector<1x16x128xbf16>
    %3 = vector.shape_cast %2 : vector<1x16x128xbf16> to vector<16x128xbf16>
    %cst = arith.constant dense<0.000000e+00> : vector<88x128xf32>
    %4 = tpu.matmul %1, %3, %cst {dimension_numbers = #tpu.dot_dimension_numbers<[1], [0], [0], [1], [0, 0, 1, 1], [], []>} : vector<88x16xbf16>, vector<16x128xbf16>, vector<88x128xf32> -> vector<88x128xf32>
    %5 = vector.extract_strided_slice %4 {offsets = [0, 0], sizes = [72, 128], strides = [1, 1]} : vector<88x128xf32> to vector<72x128xf32>
    %c1 = arith.constant 1 : index
    %c0_5 = arith.constant 0 : index
    %c0_6 = arith.constant 0 : index
    %6 = vector.load %arg2[%c1, %c0_5, %c0_6] : memref<4x16x128xbf16, #tpu.memory_space<vmem>>, vector<1x16x128xbf16>
    %7 = vector.shape_cast %6 : vector<1x16x128xbf16> to vector<16x128xbf16>
    %cst_7 = arith.constant dense<0.000000e+00> : vector<88x128xf32>
    %8 = tpu.matmul %1, %7, %cst_7 {dimension_numbers = #tpu.dot_dimension_numbers<[1], [0], [0], [1], [0, 0, 1, 1], [], []>} : vector<88x16xbf16>, vector<16x128xbf16>, vector<88x128xf32> -> vector<88x128xf32>
    %9 = vector.extract_strided_slice %8 {offsets = [1, 0], sizes = [72, 128], strides = [1, 1]} : vector<88x128xf32> to vector<72x128xf32>
    %10 = arith.addf %5, %9 : vector<72x128xf32>
    %c2 = arith.constant 2 : index
    %c0_8 = arith.constant 0 : index
    %c0_9 = arith.constant 0 : index
    %11 = vector.load %arg2[%c2, %c0_8, %c0_9] : memref<4x16x128xbf16, #tpu.memory_space<vmem>>, vector<1x16x128xbf16>
    %12 = vector.shape_cast %11 : vector<1x16x128xbf16> to vector<16x128xbf16>
    %cst_10 = arith.constant dense<0.000000e+00> : vector<88x128xf32>
    %13 = tpu.matmul %1, %12, %cst_10 {dimension_numbers = #tpu.dot_dimension_numbers<[1], [0], [0], [1], [0, 0, 1, 1], [], []>} : vector<88x16xbf16>, vector<16x128xbf16>, vector<88x128xf32> -> vector<88x128xf32>
    %14 = vector.extract_strided_slice %13 {offsets = [9, 0], sizes = [72, 128], strides = [1, 1]} : vector<88x128xf32> to vector<72x128xf32>
    %15 = arith.addf %10, %14 : vector<72x128xf32>
    %c3 = arith.constant 3 : index
    %c0_11 = arith.constant 0 : index
    %c0_12 = arith.constant 0 : index
    %16 = vector.load %arg2[%c3, %c0_11, %c0_12] : memref<4x16x128xbf16, #tpu.memory_space<vmem>>, vector<1x16x128xbf16>
    %17 = vector.shape_cast %16 : vector<1x16x128xbf16> to vector<16x128xbf16>
    %cst_13 = arith.constant dense<0.000000e+00> : vector<88x128xf32>
    %18 = tpu.matmul %1, %17, %cst_13 {dimension_numbers = #tpu.dot_dimension_numbers<[1], [0], [0], [1], [0, 0, 1, 1], [], []>} : vector<88x16xbf16>, vector<16x128xbf16>, vector<88x128xf32> -> vector<88x128xf32>
    %19 = vector.extract_strided_slice %18 {offsets = [10, 0], sizes = [72, 128], strides = [1, 1]} : vector<88x128xf32> to vector<72x128xf32>
    %20 = arith.addf %15, %19 : vector<72x128xf32>
    %21 = arith.truncf %20 : vector<72x128xf32> to vector<72x128xbf16>
    %c0_14 = arith.constant 0 : index
    %c0_15 = arith.constant 0 : index
    %c0_16 = arith.constant 0 : index
    %22 = vector.load %arg4[%c0_14, %c0_15, %c0_16] : memref<1x72x128xbf16, #tpu.memory_space<vmem>>, vector<1x72x128xbf16>
    %23 = vector.shape_cast %22 : vector<1x72x128xbf16> to vector<72x128xbf16>
    %24 = vector.shape_cast %21 : vector<72x128xbf16> to vector<1x72x128xbf16>
    tpu.vector_store %arg4[%c0_14, %c0_15, %c0_16], %24 {strides = array<i32>} : memref<1x72x128xbf16, #tpu.memory_space<vmem>>, vector<1x72x128xbf16>,
    %c0_17 = arith.constant 0 : index
    %c0_18 = arith.constant 0 : index
    %25 = vector.load %arg3[%c0_17, %c0_18] : memref<72x1xf32, #tpu.memory_space<vmem>>, vector<72x1xf32>
    %26 = vector.broadcast %25 : vector<72x1xf32> to vector<72x128xf32>
    %27 = arith.mulf %20, %26 : vector<72x128xf32>
    %cst_19 = arith.constant dense<0.000000e+00> : vector<128xf32>
    %28 = vector.multi_reduction <add>, %27, %cst_19 [0] : vector<72x128xf32> to vector<128xf32>
    %29 = vector.shape_cast %28 : vector<128xf32> to vector<1x128xf32>
    %cst_20 = arith.constant 1.562500e-02 : f32
    %30 = vector.broadcast %cst_20 : f32 to vector<1x128xf32>
    %31 = arith.mulf %29, %30 : vector<1x128xf32>
    %32 = vector.broadcast %31 : vector<1x128xf32> to vector<72x128xf32>
    %33 = arith.subf %20, %32 : vector<72x128xf32>
    %34 = vector.broadcast %25 : vector<72x1xf32> to vector<72x128xf32>
    %35 = arith.mulf %33, %34 : vector<72x128xf32>
    %c0_21 = arith.constant 0 : index
    %c0_22 = arith.constant 0 : index
    %c0_23 = arith.constant 0 : index
    %36 = vector.load %arg5[%c0_21, %c0_22, %c0_23] : memref<1x1x128xf32, #tpu.memory_space<vmem>>, vector<1x1x128xf32>
    %37 = vector.shape_cast %36 : vector<1x1x128xf32> to vector<1x128xf32>
    %38 = vector.shape_cast %29 : vector<1x128xf32> to vector<1x1x128xf32>
    tpu.vector_store %arg5[%c0_21, %c0_22, %c0_23], %38 {strides = array<i32>} : memref<1x1x128xf32, #tpu.memory_space<vmem>>, vector<1x1x128xf32>,
    %39 = arith.mulf %35, %35 : vector<72x128xf32>
    %cst_24 = arith.constant dense<0.000000e+00> : vector<128xf32>
    %40 = vector.multi_reduction <add>, %39, %cst_24 [0] : vector<72x128xf32> to vector<128xf32>
    %41 = vector.shape_cast %40 : vector<128xf32> to vector<1x128xf32>
    %c0_25 = arith.constant 0 : index
    %c0_26 = arith.constant 0 : index
    %c0_27 = arith.constant 0 : index
    %42 = vector.load %arg6[%c0_25, %c0_26, %c0_27] : memref<1x1x128xf32, #tpu.memory_space<vmem>>, vector<1x1x128xf32>
    %43 = vector.shape_cast %42 : vector<1x1x128xf32> to vector<1x128xf32>
    %44 = vector.shape_cast %41 : vector<1x128xf32> to vector<1x1x128xf32>
    tpu.vector_store %arg6[%c0_25, %c0_26, %c0_27], %44 {strides = array<i32>} : memref<1x1x128xf32, #tpu.memory_space<vmem>>, vector<1x1x128xf32>,
    return
  }
  func.func @transform_0(%arg0: i32) -> (i32, i32, i32) {
    %c0_i32 = arith.constant 0 : i32
    %c0_i32_0 = arith.constant 0 : i32
    %c0_i32_1 = arith.constant 0 : i32
    return %arg0, %c0_i32, %c0_i32_0 : i32, i32, i32
  }
  func.func @transform_1(%arg0: i32) -> (i32, i32, i32) {
    %c0_i32 = arith.constant 0 : i32
    %c0_i32_0 = arith.constant 0 : i32
    %c0_i32_1 = arith.constant 0 : i32
    %c0_i32_2 = arith.constant 0 : i32
    return %c0_i32, %c0_i32_0, %c0_i32_1 : i32, i32, i32
  }
  func.func @transform_2(%arg0: i32) -> (i32, i32) {
    %c0_i32 = arith.constant 0 : i32
    %c0_i32_0 = arith.constant 0 : i32
    %c0_i32_1 = arith.constant 0 : i32
    return %c0_i32, %c0_i32_0 : i32, i32
  }
  func.func @transform_3(%arg0: i32) -> (i32, i32, i32) {
    %c0_i32 = arith.constant 0 : i32
    %c0_i32_0 = arith.constant 0 : i32
    %c0_i32_1 = arith.constant 0 : i32
    return %arg0, %c0_i32, %c0_i32_0 : i32, i32, i32
  }
  func.func @transform_4(%arg0: i32) -> (i32, i32, i32) {
    %c0_i32 = arith.constant 0 : i32
    %c0_i32_0 = arith.constant 0 : i32
    %c0_i32_1 = arith.constant 0 : i32
    return %arg0, %c0_i32, %c0_i32_0 : i32, i32, i32
  }
  func.func @transform_5(%arg0: i32) -> (i32, i32, i32) {
    %c0_i32 = arith.constant 0 : i32
    %c0_i32_0 = arith.constant 0 : i32
    %c0_i32_1 = arith.constant 0 : i32
    return %arg0, %c0_i32, %c0_i32_0 : i32, i32, i32
  }
}

module attributes {stable_mosaic.version = 11 : i64} {
  func.func @bn_lrelu_kernel(%arg0: i32, %arg1: memref<144x128xbf16, #tpu.memory_space<vmem>>, %arg2: memref<1x128xf32, #tpu.memory_space<vmem>>, %arg3: memref<1x128xf32, #tpu.memory_space<vmem>>, %arg4: memref<144x128xf32, #tpu.memory_space<vmem>>) attributes {dimension_semantics = [#tpu.dimension_semantics<parallel>], iteration_bounds = array<i64: 1>, scalar_prefetch = 0 : i64, scratch_operands = 0 : i64, tpu.core_type = #tpu.core_type<tc>, window_params = [{transform_indices = @transform_0, window_bounds = array<i64: 144, 128>}, {pipeline_mode = #tpu.pipeline_mode<synchronous>, transform_indices = @transform_1, window_bounds = array<i64: 1, 128>}, {pipeline_mode = #tpu.pipeline_mode<synchronous>, transform_indices = @transform_2, window_bounds = array<i64: 1, 128>}, {transform_indices = @transform_3, window_bounds = array<i64: 144, 128>}]} {
    %c0 = arith.constant 0 : index
    %c0_0 = arith.constant 0 : index
    %0 = vector.load %arg1[%c0, %c0_0] : memref<144x128xbf16, #tpu.memory_space<vmem>>, vector<144x128xbf16>
    %1 = arith.extf %0 : vector<144x128xbf16> to vector<144x128xf32>
    %c0_1 = arith.constant 0 : index
    %c0_2 = arith.constant 0 : index
    %2 = vector.load %arg2[%c0_1, %c0_2] : memref<1x128xf32, #tpu.memory_space<vmem>>, vector<1x128xf32>
    %3 = vector.broadcast %2 : vector<1x128xf32> to vector<144x128xf32>
    %4 = arith.mulf %1, %3 : vector<144x128xf32>
    %c0_3 = arith.constant 0 : index
    %c0_4 = arith.constant 0 : index
    %5 = vector.load %arg3[%c0_3, %c0_4] : memref<1x128xf32, #tpu.memory_space<vmem>>, vector<1x128xf32>
    %6 = vector.broadcast %5 : vector<1x128xf32> to vector<144x128xf32>
    %7 = arith.addf %4, %6 : vector<144x128xf32>
    %cst = arith.constant 0.000000e+00 : f32
    %8 = vector.broadcast %cst : f32 to vector<144x128xf32>
    %9 = arith.cmpf ogt, %7, %8 : vector<144x128xf32>
    %cst_5 = arith.constant 2.000000e-01 : f32
    %10 = vector.broadcast %cst_5 : f32 to vector<144x128xf32>
    %11 = arith.mulf %10, %7 : vector<144x128xf32>
    %12 = arith.select %9, %7, %11 : vector<144x128xi1>, vector<144x128xf32>
    %c0_6 = arith.constant 0 : index
    %c0_7 = arith.constant 0 : index
    %13 = vector.load %arg4[%c0_6, %c0_7] : memref<144x128xf32, #tpu.memory_space<vmem>>, vector<144x128xf32>
    tpu.vector_store %arg4[%c0_6, %c0_7], %12 {strides = array<i32>} : memref<144x128xf32, #tpu.memory_space<vmem>>, vector<144x128xf32>,
    return
  }
  func.func @transform_0(%arg0: i32) -> (i32, i32) {
    %c0_i32 = arith.constant 0 : i32
    %c0_i32_0 = arith.constant 0 : i32
    return %arg0, %c0_i32 : i32, i32
  }
  func.func @transform_1(%arg0: i32) -> (i32, i32) {
    %c0_i32 = arith.constant 0 : i32
    %c0_i32_0 = arith.constant 0 : i32
    %c0_i32_1 = arith.constant 0 : i32
    return %c0_i32, %c0_i32_0 : i32, i32
  }
  func.func @transform_2(%arg0: i32) -> (i32, i32) {
    %c0_i32 = arith.constant 0 : i32
    %c0_i32_0 = arith.constant 0 : i32
    %c0_i32_1 = arith.constant 0 : i32
    return %c0_i32, %c0_i32_0 : i32, i32
  }
  func.func @transform_3(%arg0: i32) -> (i32, i32) {
    %c0_i32 = arith.constant 0 : i32
    %c0_i32_0 = arith.constant 0 : i32
    return %arg0, %c0_i32 : i32, i32
  }
}

</mosaic_0001>

<bundles_post_ra>
// kernel: encoder_block.3
= control target key start
LH: loop header
LB: loop body
LE: loop exit
PB: predicated region body
PF: predicated region fallthrough
CT: control target
= control target key end

     0   :  { %s369_s0 = inlined_call_operand.vmem [shape: bf16[144,128], index: 0, kind: input, shape index: {}]   ;;  %s370_s1 = inlined_call_operand.vmem [shape: f32[1,128], index: 1, kind: input, shape index: {}]   ;;  %s371_s2 = inlined_call_operand.vmem [shape: f32[1,128], index: 2, kind: input, shape index: {}]   ;;  %s372_s3 = inlined_call_operand.vmem [shape: f32[144,128], index: 3, kind: output, shape index: {}]  }
   0x1   :  { %v179_v0 = vld [vmem:[%s369_s0] sm:$0xff]   ;;  %v214_v4 = vld [vmem:[%s369_s0 + $0x8] sm:$0xff]   ;;  %v215_v5 = vld [vmem:[%s369_s0 + $0x10] sm:$0xff]  }
   0x2   :  { %v248_v1 = vld [vmem:[%s370_s1] ss:$0 sm:$0xff]  ;;  %v180_v2 = vunpack.c.l.bf16 %v179_v0  ;;  %v181_v3 = vunpack.c.h.bf16 %v179_v0  ;;  %v216_v6 = vld [vmem:[%s369_s0 + $0x18] sm:$0xff]   ;;  %v184_v8 = vunpack.c.l.bf16 %v214_v4  ;;  %v185_v9 = vunpack.c.h.bf16 %v214_v4  ;;  %v218_v36 = vld [vmem:[%s369_s0 + $0x28] sm:$0xff]  }
   0x3   :  { %v262_v7 = vld [vmem:[%s371_s2] ss:$0 sm:$0xff]  ;;  %v188_v10 = vunpack.c.l.bf16 %v215_v5  ;;  %v189_v11 = vunpack.c.h.bf16 %v215_v5  ;;  %v192_v14 = vunpack.c.l.bf16 %v216_v6  ;;  %v193_v15 = vunpack.c.h.bf16 %v216_v6  ;;  %v219_v48 = vld [vmem:[%s369_s0 + $0x30] sm:$0xff]   ;;  %v220_v55 = vld [vmem:[%s369_s0 + $0x38] sm:$0xff]  }
   0x4   :  { %v57_v12 = vmul.f32 %v180_v2, %v248_v1  ;;  %v58_v13 = vmul.f32 %v181_v3, %v248_v1  ;;  %v59_v16 = vmul.f32 %v184_v8, %v248_v1  ;;  %v60_v17 = vmul.f32 %v185_v9, %v248_v1  ;;  %v217_v28 = vld [vmem:[%s369_s0 + $0x20] sm:$0xff]  }
   0x5   :  { %v61_v18 = vmul.f32 %v188_v10, %v248_v1  ;;  %v62_v19 = vmul.f32 %v189_v11, %v248_v1  ;;  %v63_v22 = vmul.f32 %v192_v14, %v248_v1  ;;  %v64_v23 = vmul.f32 %v193_v15, %v248_v1  ;;  %v221_v14 = vld [vmem:[%s369_s0 + $0x40] sm:$0xff]  }
   0x6   :  { %v82_v20 = vadd.f32 %v262_v7, %v57_v12  ;;  %v83_v21 = vadd.f32 %v262_v7, %v58_v13  ;;  %v84_v24 = vadd.f32 %v262_v7, %v59_v16  ;;  %v85_v25 = vadd.f32 %v262_v7, %v60_v17 }
   0x7   :  { %v86_v26 = vadd.f32 %v262_v7, %v61_v18  ;;  %v87_v27 = vadd.f32 %v262_v7, %v62_v19  ;;  %v88_v41 = vadd.f32 %v262_v7, %v63_v22  ;;  %v89_v42 = vadd.f32 %v262_v7, %v64_v23 }
   0x8   :  { %vm100_vm0 = vcmp.gt.f32.partialorder %v82_v20, 0.0  ;;  %v118_v29 = vmul.f32 0.2, %v82_v20  ;;  %vm101_vm1 = vcmp.gt.f32.partialorder %v83_v21, 0.0  ;;  %v119_v30 = vmul.f32 0.2, %v83_v21 }
   0x9   :  { %vm102_vm2 = vcmp.gt.f32.partialorder %v84_v24, 0.0  ;;  %v120_v31 = vmul.f32 0.2, %v84_v24  ;;  %vm103_vm3 = vcmp.gt.f32.partialorder %v85_v25, 0.0  ;;  %v121_v32 = vmul.f32 0.2, %v85_v25 }
   0xa   :  { %v136_v33 = vsel %vm100_vm0, %v82_v20, %v118_v29  ;;  %v137_v34 = vsel %vm101_vm1, %v83_v21, %v119_v30  ;;  %vm104_vm4 = vcmp.gt.f32.partialorder %v86_v26, 0.0  ;;  %v122_v35 = vmul.f32 0.2, %v86_v26 }
   0xb   :  { %154 = vst [vmem:[%s372_s3] sm:$0xff] %v136_v33  ;;  %155 = vst [vmem:[%s372_s3 + $0x8] sm:$0xff] %v137_v34  ;;  %v138_v37 = vsel %vm102_vm2, %v84_v24, %v120_v31  ;;  %v139_v38 = vsel %vm103_vm3, %v85_v25, %v121_v32  ;;  %vm105_vm5 = vcmp.gt.f32.partialorder %v87_v27, 0.0  ;;  %v123_v39 = vmul.f32 0.2, %v87_v27 }
   0xc   :  { %156 = vst [vmem:[%s372_s3 + $0x10] sm:$0xff] %v138_v37  ;;  %157 = vst [vmem:[%s372_s3 + $0x18] sm:$0xff] %v139_v38  ;;  %v140_v40 = vsel %vm104_vm4, %v86_v26, %v122_v35  ;;  %v196_v43 = vunpack.c.l.bf16 %v217_v28  ;;  %v197_v45 = vunpack.c.h.bf16 %v217_v28  ;;  %v200_v46 = vunpack.c.l.bf16 %v218_v36 }
   0xd   :  { %158 = vst [vmem:[%s372_s3 + $0x20] sm:$0xff] %v140_v40  ;;  %v141_v44 = vsel %vm105_vm5, %v87_v27, %v123_v39  ;;  %v201_v47 = vunpack.c.h.bf16 %v218_v36  ;;  %vm106_vm6 = vcmp.gt.f32.partialorder %v88_v41, 0.0  ;;  %v124_v49 = vmul.f32 0.2, %v88_v41 }
   0xe   :  { %159 = vst [vmem:[%s372_s3 + $0x28] sm:$0xff] %v141_v44  ;;  %vm107_vm7 = vcmp.gt.f32.partialorder %v89_v42, 0.0  ;;  %v125_v50 = vmul.f32 0.2, %v89_v42  ;;  %v65_v51 = vmul.f32 %v196_v43, %v248_v1  ;;  %v66_v52 = vmul.f32 %v197_v45, %v248_v1 }
   0xf   :  { %v67_v53 = vmul.f32 %v200_v46, %v248_v1  ;;  %v68_v54 = vmul.f32 %v201_v47, %v248_v1  ;;  %v142_v56 = vsel %vm106_vm6, %v88_v41, %v124_v49  ;;  %v204_v58 = vunpack.c.l.bf16 %v219_v48 }
  0x10   :  { %v143_v57 = vsel %vm107_vm7, %v89_v42, %v125_v50  ;;  %v205_v59 = vunpack.c.h.bf16 %v219_v48  ;;  %160 = vst [vmem:[%s372_s3 + $0x30] sm:$0xff] %v142_v56  ;;  %v90_v60 = vadd.f32 %v262_v7, %v65_v51  ;;  %v91_v61 = vadd.f32 %v262_v7, %v66_v52 }
  0x11   :  { %161 = vst [vmem:[%s372_s3 + $0x38] sm:$0xff] %v143_v57  ;;  %v92_v62 = vadd.f32 %v262_v7, %v67_v53  ;;  %v93_v63 = vadd.f32 %v262_v7, %v68_v54  ;;  %v69_v0 = vmul.f32 %v204_v58, %v248_v1  ;;  %v208_v3 = vunpack.c.l.bf16 %v220_v55 }
  0x12   :  { %v70_v2 = vmul.f32 %v205_v59, %v248_v1  ;;  %v209_v4 = vunpack.c.h.bf16 %v220_v55  ;;  %vm108_vm8 = vcmp.gt.f32.partialorder %v90_v60, 0.0  ;;  %v126_v5 = vmul.f32 0.2, %v90_v60 }
  0x13   :  { %vm109_vm9 = vcmp.gt.f32.partialorder %v91_v61, 0.0  ;;  %v127_v6 = vmul.f32 0.2, %v91_v61  ;;  %vm110_vm10 = vcmp.gt.f32.partialorder %v92_v62, 0.0  ;;  %v128_v8 = vmul.f32 0.2, %v92_v62 }
  0x14   :  { %vm111_vm11 = vcmp.gt.f32.partialorder %v93_v63, 0.0  ;;  %v129_v9 = vmul.f32 0.2, %v93_v63  ;;  %v144_v10 = vsel %vm108_vm8, %v90_v60, %v126_v5  ;;  %v94_v12 = vadd.f32 %v262_v7, %v69_v0 }
  0x15   :  { %v145_v11 = vsel %vm109_vm9, %v91_v61, %v127_v6  ;;  %v95_v13 = vadd.f32 %v262_v7, %v70_v2  ;;  %162 = vst [vmem:[%s372_s3 + $0x40] sm:$0xff] %v144_v10  ;;  %v146_v15 = vsel %vm110_vm10, %v92_v62, %v128_v8  ;;  %v71_v17 = vmul.f32 %v208_v3, %v248_v1 }
  0x16   :  { %163 = vst [vmem:[%s372_s3 + $0x48] sm:$0xff] %v145_v11  ;;  %v147_v16 = vsel %vm111_vm11, %v93_v63, %v129_v9  ;;  %v72_v18 = vmul.f32 %v209_v4, %v248_v1  ;;  %164 = vst [vmem:[%s372_s3 + $0x50] sm:$0xff] %v146_v15  ;;  %vm112_vm12 = vcmp.gt.f32.partialorder %v94_v12, 0.0  ;;  %v130_v19 = vmul.f32 0.2, %v94_v12 }
  0x17   :  { %165 = vst [vmem:[%s372_s3 + $0x58] sm:$0xff] %v147_v16  ;;  %vm113_vm13 = vcmp.gt.f32.partialorder %v95_v13, 0.0  ;;  %v131_v20 = vmul.f32 0.2, %v95_v13  ;;  %v96_v21 = vadd.f32 %v262_v7, %v71_v17  ;;  %v212_v23 = vunpack.c.l.bf16 %v221_v14 }
  0x18   :  { %v97_v22 = vadd.f32 %v262_v7, %v72_v18  ;;  %v213_v24 = vunpack.c.h.bf16 %v221_v14  ;;  %v148_v25 = vsel %vm112_vm12, %v94_v12, %v130_v19 }
  0x19   :  { %v149_v26 = vsel %vm113_vm13, %v95_v13, %v131_v20  ;;  %166 = vst [vmem:[%s372_s3 + $0x60] sm:$0xff] %v148_v25  ;;  %vm114_vm14 = vcmp.gt.f32.partialorder %v96_v21, 0.0  ;;  %v132_v27 = vmul.f32 0.2, %v96_v21  ;;  %v73_v29 = vmul.f32 %v212_v23, %v248_v1 }
  0x1a   :  { %167 = vst [vmem:[%s372_s3 + $0x68] sm:$0xff] %v149_v26  ;;  %vm115_vm15 = vcmp.gt.f32.partialorder %v97_v22, 0.0  ;;  %v133_v28 = vmul.f32 0.2, %v97_v22  ;;  %v74_v30 = vmul.f32 %v213_v24, %v248_v1 }
  0x1b   :  { %v150_v31 = vsel %vm114_vm14, %v96_v21, %v132_v27  ;;  %v98_v33 = vadd.f32 %v262_v7, %v73_v29 }
  0x1c   :  { %v151_v32 = vsel %vm115_vm15, %v97_v22, %v133_v28  ;;  %168 = vst [vmem:[%s372_s3 + $0x70] sm:$0xff] %v150_v31  ;;  %v99_v34 = vadd.f32 %v262_v7, %v74_v30 }
  0x1d   :  { %169 = vst [vmem:[%s372_s3 + $0x78] sm:$0xff] %v151_v32  ;;  %vm116_vm0 = vcmp.gt.f32.partialorder %v98_v33, 0.0  ;;  %v134_v35 = vmul.f32 0.2, %v98_v33 }
  0x1e   :  { %vm117_vm1 = vcmp.gt.f32.partialorder %v99_v34, 0.0  ;;  %v135_v36 = vmul.f32 0.2, %v99_v34 }
  0x1f   :  { %v152_v37 = vsel %vm116_vm0, %v98_v33, %v134_v35 }
  0x20   :  { %v153_v1 = vsel %vm117_vm1, %v99_v34, %v135_v36  ;;  %170 = vst [vmem:[%s372_s3 + $0x80] sm:$0xff] %v152_v37 }
  0x21   :  { %171 = vst [vmem:[%s372_s3 + $0x88] sm:$0xff] %v153_v1 }

// kernel: encoder_block.2
= control target key start
LH: loop header
LB: loop body
LE: loop exit
PB: predicated region body
PF: predicated region fallthrough
CT: control target
= control target key end

     0   :  { %s1302_s18 = smov 0   ;;  %s1517_s0 = inlined_call_operand.vmem [shape: bf16[2,88,16], index: 0, kind: input, shape index: {}]   ;;  %s1518_s1 = inlined_call_operand.vmem [shape: bf16[4,16,128], index: 1, kind: input, shape index: {}]   ;;  %s1519_s2 = inlined_call_operand.vmem [shape: f32[72,1], index: 2, kind: input, shape index: {}]   ;;  %s1520_s3 = inlined_call_operand.vmem [shape: bf16[2,72,128], index: 3, kind: output, shape index: {0}]   ;;  %s1521_s4 = inlined_call_operand.vmem [shape: f32[2,1,128], index: 4, kind: output, shape index: {1}]   ;;  %s1522_s5 = inlined_call_operand.vmem [shape: f32[2,1,128], index: 5, kind: output, shape index: {2}]  }
   0x1 LB: > { %s1066_s19 = sadd.s32 4294967295, %s1269_s18   ;;  %p1070_p0 = scmp.ge.s32.totalorder %s1269_s18, 1  ;;  %s1269_s18 = sphi %s1302_s18, %s16_s18  }
   0x2   : > { %p192_p1 = scmp.lt.s32.totalorder %s1269_s18, 3 }
   0x4   : > { %p193_p2 = pnand %p1070_p0, %p192_p1 }
   0x5   : > { %p226_p3 = scmp.lt.s32.totalorder (!%p193_p2), %s1066_s19, 1 }
   0x6   : > { %196 = sbr.rel (%p193_p2) target bundleno = 319 (0x13f), region = 32 }
   0xb   : > { %v1253_v0 = vld [vmem:[%s1518_s1] sm:$0xff]   ;;  %v1254_v1 = vld [vmem:[%s1518_s1 + $0x8] sm:$0xff]   ;;  %s1524_s19 = smov (!%p226_p3, %s1066_s19), 1  ;;  %v1256_v2 = vld [vmem:[%s1518_s1 + $0x10] sm:$0xff]   ;;  %v1271_v6 = vmov 0   ;;  %vm290_vm0 = vcmask 130048  }
   0xc   : > { %1184 = vmatprep.subr.bf16.mxu0 %v1253_v0  ;;  %1198 = vmatprep.subr.bf16.mxu1 %v1254_v1  ;;  %v1258_v3 = vld [vmem:[%s1518_s1 + $0x18] sm:$0xff]   ;;  %s1240_s28 = smul.u32 44, %s1524_s19  ;;  %v840_v4 = vld [vmem:[%s1519_s2] sm:$0xff]  ;;  %v842_v5 = vld [vmem:[%s1519_s2 + $0x10] sm:$0xff]  ;;  %vm485_vm1 = vcmask 1046528   ;;  %vm756_vm2 = vcmask 1045504   ;;  %s238_s8 = scalar_lea.vmem %s1521_s4, %s1524_s19 }
   0xd   : > { %1185 = vmatpush3.bf16.msra.mxu0 %v1253_v0  ;;  %1199 = vmatpush3.bf16.msra.mxu1 %v1254_v1  ;;  %v841_v9 = vld [vmem:[%s1519_s2 + $0x8] sm:$0xff]  ;;  %v843_v11 = vld [vmem:[%s1519_s2 + $0x18] sm:$0xff]  ;;  %v844_v13 = vld [vmem:[%s1519_s2 + $0x20] sm:$0xff]  ;;  %s1241_s27 = smul.u32 36, %s1524_s19  ;;  %s241_s11 = scalar_lea.vmem %s1522_s5, %s1524_s19 }
   0xe   : > { %1212 = vmatprep.subr.bf16.mxu0 %v1256_v2  ;;  %1226 = vmatprep.subr.bf16.mxu1 %v1258_v3  ;;  %s1334_s10 = scalar_lea.vmem %s1517_s0, %s1240_s28  ;;  %v845_v14 = vld [vmem:[%s1519_s2 + $0x28] sm:$0xff]  ;;  %v846_v16 = vld [vmem:[%s1519_s2 + $0x30] sm:$0xff]  ;;  %v847_v17 = vld [vmem:[%s1519_s2 + $0x38] sm:$0xff] }
   0xf   : > { %1251 = vset.pattern.permute.xlu0 %v1271_v6  ;;  %1252 = vset.pattern.permute.xlu1 %v1271_v6  ;;  %v1255_v7 = vld [vmem:[%s1334_s10] sm:$0xff]   ;;  %v1257_v8 = vld [vmem:[%s1334_s10 + $0x8] sm:$0xff]   ;;  %v1259_v10 = vld [vmem:[%s1334_s10 + $0x10] sm:$0xff]   ;;  %s1434_s30 = scalar_lea.vmem %s1520_s3, %s1241_s27 }
  0x10   : > { %851 = vperm.xlu0 %1251, %v840_v4   ;;  %861 = vperm.xlu1 %1252, %v842_v5   ;;  %v1260_v12 = vld [vmem:[%s1334_s10 + $0x18] sm:$0xff]   ;;  %v1261_v15 = vld [vmem:[%s1334_s10 + $0x20] sm:$0xff]   ;;  %v1262_v18 = vld [vmem:[%s1334_s10 + $0x28] ss:$0 sps:$4 sm:$0xff]  }
  0x11   : > { %1186 = vmatprep.mubr.msk.bf16.mxu0 %vm290_vm0, %v1255_v7  ;;  %1200 = vmatprep.mubr.msk.bf16.mxu1 %vm290_vm0, %v1255_v7  ;;  %v848_v19 = vld [vmem:[%s1519_s2 + $0x40] sm:$0xff] }
  0x12   : > { %1187 = vmatmul.mubr.msk.bf16.vlgmr.msra.gmra.mxu0 %vm290_vm0, %v1257_v8  ;;  %1201 = vmatmul.mubr.msk.bf16.vlgmr.msra.gmra.mxu1 %vm290_vm0, %v1257_v8 }
  0x13   : > { %1213 = vmatpush3.bf16.msra.mxu0 %v1256_v2  ;;  %1227 = vmatpush3.bf16.msra.mxu1 %v1258_v3 }
  0x14   : > { %1190 = vmatprep.mubr.msk.bf16.mxu0 %vm290_vm0, %v1259_v10  ;;  %1204 = vmatprep.mubr.msk.bf16.mxu1 %vm290_vm0, %v1259_v10 }
  0x15   : > { %856 = vperm.xlu0 %1251, %v841_v9   ;;  %866 = vperm.xlu1 %1252, %v843_v11  }
  0x19   : > { %871 = vperm.xlu0 %1251, %v844_v13   ;;  %876 = vperm.xlu1 %1252, %v845_v14  }
  0x1a   : > { %1191 = vmatmul.mubr.msk.bf16.gmra.mxu0 %vm290_vm0, %v1260_v12  ;;  %1205 = vmatmul.mubr.msk.bf16.gmra.mxu1 %vm290_vm0, %v1260_v12 }
  0x1b   : > { %1194 = vmatprep.mubr.msk.bf16.mxu0 %vm290_vm0, %v1261_v15  ;;  %1208 = vmatprep.mubr.msk.bf16.mxu1 %vm290_vm0, %v1261_v15 }
  0x1d   : > { %881 = vperm.xlu0 %1251, %v846_v16   ;;  %886 = vperm.xlu1 %1252, %v847_v17  }
  0x21   : > { %891 = vperm.xlu0 %1251, %v848_v19  }
  0x22   : > { %1195 = vmatmul.mubr.msk.bf16.gmra.mxu0 %vm290_vm0, %v1262_v18  ;;  %1209 = vmatmul.mubr.msk.bf16.gmra.mxu1 %vm290_vm0, %v1262_v18 }
  0x23   : > { %1214 = vmatprep.mubr.msk.bf16.mxu0 %vm290_vm0, %v1255_v7  ;;  %1228 = vmatprep.mubr.msk.bf16.mxu1 %vm290_vm0, %v1255_v7 }
  0x2a   : > { %1215 = vmatmul.mubr.msk.bf16.vlgmr.msra.gmra.mxu0 %vm290_vm0, %v1257_v8  ;;  %1229 = vmatmul.mubr.msk.bf16.vlgmr.msra.gmra.mxu1 %vm290_vm0, %v1257_v8 }
  0x2b   : > { %1218 = vmatprep.mubr.msk.bf16.mxu0 %vm290_vm0, %v1259_v10  ;;  %1232 = vmatprep.mubr.msk.bf16.mxu1 %vm290_vm0, %v1259_v10 }
  0x32   : > { %1219 = vmatmul.mubr.msk.bf16.gmra.mxu0 %vm290_vm0, %v1260_v12  ;;  %1233 = vmatmul.mubr.msk.bf16.gmra.mxu1 %vm290_vm0, %v1260_v12 }
  0x33   : > { %1222 = vmatprep.mubr.msk.bf16.mxu0 %vm290_vm0, %v1261_v15  ;;  %1236 = vmatprep.mubr.msk.bf16.mxu1 %vm290_vm0, %v1261_v15 }
  0x3a   : > { %1223 = vmatmul.mubr.msk.bf16.gmra.mxu0 %vm290_vm0, %v1262_v18  ;;  %1237 = vmatmul.mubr.msk.bf16.gmra.mxu1 %vm290_vm0, %v1262_v18 }
  0x8b   : > { %v1408_v2 = vpop.permute.xlu0 %851 }
  0xd2   : > { %v1188_v20 = vpop.f32.mrf.mxu0  ;;  %v1202_v21 = vpop.f32.mrf.mxu1 }
  0xd3   : > { %v489_v47 = vrot.slane %v1202_v21, 1 }
  0xd4   : > { %v343_v22 = vpop.f32.mrf.mxu0  ;;  %v430_v23 = vpop.f32.mrf.mxu1 }
  0xd5   : > { %v486_v52 = vrot.slane %v430_v23, 1 }
  0xd6   : > { %v1189_v24 = vpop.f32.mrf.mxu0  ;;  %v1203_v25 = vpop.f32.mrf.mxu1 }
  0xd7   : > { %v491_v48 = vrot.slane %v1203_v25, 1  ;;  %v1417_v25 = vpop.permute.xlu1 %861 }
  0xd8   : > { %v346_v26 = vpop.f32.mrf.mxu0  ;;  %v433_v27 = vpop.f32.mrf.mxu1 }
  0xd9   : > { %v487_v44 = vrot.slane %v433_v27, 1  ;;  %v492_v60 = vsel %vm485_vm1, %v489_v47, %v491_v48 }
  0xda   : > { %v1387_v28 = vpop.f32.mrf.mxu0  ;;  %v1206_v29 = vpop.f32.mrf.mxu1  ;;  %v516_v12 = vadd.f32 %v1188_v20, %v492_v60 }
  0xdb   : > { %v490_v53 = vsel %vm485_vm1, %v487_v44, %v489_v47  ;;  %v488_v56 = vsel %vm485_vm1, %v486_v52, %v487_v44  ;;  %v497_v8 = vrot.slane %v1206_v29, 1  ;;  %v1451_v60 = vpop.permute.xlu1 %866 }
  0xdc   : > { %v1389_v30 = vpop.f32.mrf.mxu0  ;;  %v446_v31 = vpop.f32.mrf.mxu1  ;;  %v515_v61 = vadd.f32 %v490_v53, %v346_v26  ;;  %v514_v7 = vadd.f32 %v488_v56, %v343_v22 }
  0xdd   : > { %v493_v49 = vrot.slane %v446_v31, 1 }
  0xde   : > { %v1391_v32 = vpop.f32.mrf.mxu0  ;;  %v1393_v33 = vpop.f32.mrf.mxu1 }
  0xdf   : > { %v494_v62 = vsel %vm485_vm1, %v491_v48, %v493_v49  ;;  %v499_v63 = vrot.slane %v1393_v33, 1 }
  0xe0   : > { %v1395_v34 = vpop.f32.mrf.mxu0  ;;  %v449_v35 = vpop.f32.mrf.mxu1  ;;  %v517_v16 = vadd.f32 %v1189_v24, %v494_v62 }
  0xe1   : > { %v495_v57 = vrot.slane %v449_v35, 1  ;;  %v500_v17 = vsel %vm485_vm1, %v497_v8, %v499_v63 }
  0xe2   : > { %v1196_v36 = vpop.f32.mrf.mxu0  ;;  %v1210_v37 = vpop.f32.mrf.mxu1 }
  0xe3   : > { %v496_v13 = vsel %vm485_vm1, %v493_v49, %v495_v57  ;;  %v498_v18 = vsel %vm485_vm1, %v495_v57, %v497_v8 }
  0xe4   : > { %v1397_v38 = vpop.f32.mrf.mxu0  ;;  %v1399_v39 = vpop.f32.mrf.mxu1  ;;  %v518_v29 = vadd.f32 %v496_v13, %v1389_v30  ;;  %v519_v37 = vadd.f32 %v498_v18, %v1395_v34 }
  0xe5   : > { %v501_v31 = vrot.slane %v1399_v39, 1 }
  0xe6   : > { %v1197_v40 = vpop.f32.mrf.mxu0  ;;  %v1211_v41 = vpop.f32.mrf.mxu1 }
  0xe7   : > { %v1429_v40 = vpop.permute.xlu0 %856  ;;  %v502_v52 = vsel %vm485_vm1, %v499_v63, %v501_v31 }
  0xe8   : > { %v378_v42 = vpop.f32.mrf.mxu0  ;;  %v1401_v43 = vpop.f32.mrf.mxu1  ;;  %v521_v18 = vadd.f32 %v1391_v32, %v502_v52 }
  0xea   : > { %v1216_v45 = vpop.f32.mrf.mxu0  ;;  %v1230_v46 = vpop.f32.mrf.mxu1 }
  0xeb   : > { %v622_v58 = vrot.slane %v1216_v45, 1  ;;  %v758_v14 = vrot.slane %v1230_v46, 2 }
  0xec   : > { %v566_v50 = vpop.f32.mrf.mxu0  ;;  %v701_v51 = vpop.f32.mrf.mxu1 }
  0xee   : > { %v1217_v54 = vpop.f32.mrf.mxu0  ;;  %v1231_v55 = vpop.f32.mrf.mxu1 }
  0xef   : > { %v624_v59 = vrot.slane %v1217_v54, 1  ;;  %v760_v4 = vrot.slane %v1231_v55, 2 }
  0xf0   : > { %v568_v0 = vpop.f32.mrf.mxu0  ;;  %v703_v1 = vpop.f32.mrf.mxu1 }
  0xf1   : > { %v625_v3 = vsel %vm485_vm1, %v622_v58, %v624_v59  ;;  %v621_v5 = vrot.slane %v568_v0, 1  ;;  %v757_v6 = vrot.slane %v703_v1, 2  ;;  %v761_v23 = vsel %vm756_vm2, %v758_v14, %v760_v4 }
  0xf2   : > { %v650_v9 = vadd.f32 %v625_v3, %v515_v61  ;;  %v1220_v10 = vpop.f32.mrf.mxu0  ;;  %v1234_v11 = vpop.f32.mrf.mxu1 }
  0xf3   : > { %v623_v15 = vsel %vm485_vm1, %v621_v5, %v622_v58  ;;  %v759_v20 = vsel %vm756_vm2, %v757_v6, %v758_v14  ;;  %v630_v30 = vrot.slane %v1220_v10, 1  ;;  %v766_v53 = vrot.slane %v1234_v11, 2  ;;  %v1458_v6 = vpop.permute.xlu0 %871 }
  0xf4   : > { %v649_v19 = vadd.f32 %v623_v15, %v514_v7  ;;  %v581_v21 = vpop.f32.mrf.mxu0  ;;  %v716_v22 = vpop.f32.mrf.mxu1  ;;  %v1422_v24 = vadd.f32 %v761_v23, %v650_v9  ;;  %v503_v58 = vrot.slane %v1401_v43, 1 }
  0xf5   : > { %v626_v26 = vrot.slane %v581_v21, 1  ;;  %v762_v27 = vrot.slane %v716_v22, 2 }
  0xf6   : > { %v1424_v33 = vadd.f32 %v759_v20, %v649_v19  ;;  %v1221_v35 = vpop.f32.mrf.mxu0  ;;  %v1426_v36 = vpop.f32.mrf.mxu1  ;;  %v504_v19 = vsel %vm485_vm1, %v501_v31, %v503_v58 }
  0xf7   : > { %v627_v39 = vsel %vm485_vm1, %v624_v59, %v626_v26  ;;  %v632_v41 = vrot.slane %v1221_v35, 1  ;;  %v763_v45 = vsel %vm756_vm2, %v760_v4, %v762_v27  ;;  %v768_v34 = vrot.slane %v1426_v36, 2 }
  0xf8   : > { %v1136_v42 = vpack.c.bf16 %v1422_v24, %v1424_v33  ;;  %v651_v44 = vadd.f32 %v627_v39, %v516_v12  ;;  %v584_v46 = vpop.f32.mrf.mxu0  ;;  %v719_v47 = vpop.f32.mrf.mxu1  ;;  %v894_v48 = vmul.f32 %v1408_v2, %v1424_v33  ;;  %v895_v59 = vmul.f32 %v1429_v40, %v1422_v24 }
  0xf9   : > { %v633_v49 = vsel %vm485_vm1, %v630_v30, %v632_v41  ;;  %v628_v50 = vrot.slane %v584_v46, 1  ;;  %v764_v51 = vrot.slane %v719_v47, 2  ;;  %v769_v0 = vsel %vm756_vm2, %v766_v53, %v768_v34 }
  0xfa   : > { %1137 = vst [vmem:[%s1434_s30] sm:$0xff] %v1136_v42   ;;  %v1446_v54 = vadd.f32 %v763_v45, %v651_v44  ;;  %v654_v55 = vadd.f32 %v633_v49, %v519_v37  ;;  %v1224_v56 = vpop.f32.mrf.mxu0  ;;  %v1238_v57 = vpop.f32.mrf.mxu1  ;;  %v903_v43 = vadd.f32 %v895_v59, %v894_v48  ;;  %v522_v36 = vadd.f32 %v504_v19, %v1397_v38 }
  0xfb   : > { %v629_v61 = vsel %vm485_vm1, %v626_v26, %v628_v50  ;;  %v631_v62 = vsel %vm485_vm1, %v628_v50, %v630_v30  ;;  %v765_v7 = vsel %vm756_vm2, %v762_v27, %v764_v51  ;;  %v767_v8 = vsel %vm756_vm2, %v764_v51, %v766_v53 }
  0xfc   : > { %v896_v63 = vmul.f32 %v1417_v25, %v1446_v54  ;;  %v652_v1 = vadd.f32 %v629_v61, %v517_v16  ;;  %v653_v3 = vadd.f32 %v631_v62, %v518_v29  ;;  %v597_v4 = vpop.f32.mrf.mxu0  ;;  %v732_v5 = vpop.f32.mrf.mxu1  ;;  %v1462_v10 = vadd.f32 %v769_v0, %v654_v55 }
  0xfd   : > { %v634_v9 = vrot.slane %v597_v4, 1  ;;  %v770_v13 = vrot.slane %v732_v5, 2  ;;  %v520_v16 = vadd.f32 %v1387_v28, %v500_v17  ;;  %v1478_v17 = vpop.permute.xlu1 %876  ;;  %v638_v32 = vrot.slane %v1224_v56, 1 }
  0xfe   : > { %v1464_v11 = vadd.f32 %v765_v7, %v652_v1  ;;  %v1466_v12 = vadd.f32 %v767_v8, %v653_v3  ;;  %v1225_v14 = vpop.f32.mrf.mxu0  ;;  %v1239_v15 = vpop.f32.mrf.mxu1  ;;  %v904_v22 = vadd.f32 %v903_v43, %v896_v63  ;;  %v774_v42 = vrot.slane %v1238_v57, 2 }
  0xff   : > { %v635_v21 = vsel %vm485_vm1, %v632_v41, %v634_v9  ;;  %v771_v39 = vsel %vm756_vm2, %v768_v34, %v770_v13  ;;  %v882_v41 = vpop.permute.xlu0 %881  ;;  %v899_v47 = vmul.f32 %v1478_v17, %v1462_v10 }
 0x100   : > { %v1141_v23 = vpack.c.bf16 %v1464_v11, %v1446_v54  ;;  %v1146_v20 = vpack.c.bf16 %v1462_v10, %v1466_v12  ;;  %v897_v26 = vmul.f32 %v1451_v60, %v1464_v11  ;;  %v600_v27 = vpop.f32.mrf.mxu0  ;;  %v735_v28 = vpop.f32.mrf.mxu1  ;;  %v655_v29 = vadd.f32 %v635_v21, %v520_v16 }
 0x101   : > { %v636_v35 = vrot.slane %v600_v27, 1  ;;  %v772_v31 = vrot.slane %v735_v28, 2  ;;  %v898_v37 = vmul.f32 %v1458_v6, %v1466_v12  ;;  %v887_v56 = vpop.permute.xlu1 %886 }
 0x102   : > { %1153 = vst [vmem:[%s1434_s30 + $0x8] sm:$0xff] %v1141_v23   ;;  %1154 = vst [vmem:[%s1434_s30 + $0x10] sm:$0xff] %v1146_v20   ;;  %v905_v30 = vadd.f32 %v904_v22, %v897_v26  ;;  %v791_v44 = vadd.f32 %v771_v39, %v655_v29 }
 0x103   : > { %v637_v45 = vsel %vm485_vm1, %v634_v9, %v636_v35  ;;  %v639_v46 = vsel %vm485_vm1, %v636_v35, %v638_v32  ;;  %v773_v50 = vsel %vm756_vm2, %v770_v13, %v772_v31  ;;  %v775_v51 = vsel %vm756_vm2, %v772_v31, %v774_v42  ;;  %v892_v62 = vpop.permute.xlu0 %891 }
 0x104   : > { %v906_v38 = vadd.f32 %v905_v30, %v898_v37  ;;  %v656_v48 = vadd.f32 %v637_v45, %v521_v18  ;;  %v657_v49 = vadd.f32 %v639_v46, %v522_v36  ;;  %v900_v34 = vmul.f32 %v882_v41, %v791_v44 }
 0x106   : > { %v907_v52 = vadd.f32 %v906_v38, %v899_v47  ;;  %v792_v53 = vadd.f32 %v773_v50, %v656_v48  ;;  %v793_v55 = vadd.f32 %v775_v51, %v657_v49 }
 0x108   : > { %v908_v57 = vadd.f32 %v907_v52, %v900_v34  ;;  %v1132_v58 = vpack.c.bf16 %v793_v55, %v793_v55  ;;  %v1151_v59 = vpack.c.bf16 %v792_v53, %v791_v44  ;;  %v901_v61 = vmul.f32 %v887_v56, %v792_v53 }
 0x109   : > { %v902_v63 = vmul.f32 %v892_v62, %v793_v55 }
 0x10a   : > { %1155 = vst [vmem:[%s1434_s30 + $0x18] sm:$0xff] %v1151_v59   ;;  %839 = vst [vmem:[%s1434_s30 + $0x20] sm:$0xf] %v1132_v58  ;;  %v909_v0 = vadd.f32 %v908_v57, %v901_v61 }
 0x10c   : > { %v910_v1 = vadd.f32 %v909_v0, %v902_v63 }
 0x10e   : > { %v911_v3 = vrot.slane %v910_v1, 4 }
 0x110   : > { %v912_v4 = vadd.f32 %v911_v3, %v910_v1 }
 0x112   : > { %v913_v5 = vrot.slane %v912_v4, 2 }
 0x114   : > { %v914_v43 = vadd.f32 %v913_v5, %v912_v4 }
 0x116   : > { %v915_v7 = vrot.slane %v914_v43, 1 }
 0x118   : > { %v916_v8 = vadd.f32 %v915_v7, %v914_v43 }
 0x11a   : > { %v917_v9 = vmul.f32 0.015625, %v916_v8  ;;  %936 = vst [vmem:[%s238_s8] sm:$0x1] %v916_v8 }
 0x11c   : > { %v918_v13 = vsub.f32 %v1424_v33, %v917_v9  ;;  %v919_v14 = vsub.f32 %v1422_v24, %v917_v9  ;;  %v920_v15 = vsub.f32 %v1446_v54, %v917_v9  ;;  %v921_v16 = vsub.f32 %v1464_v11, %v917_v9 }
 0x11d   : > { %v922_v18 = vsub.f32 %v1466_v12, %v917_v9  ;;  %v923_v23 = vsub.f32 %v1462_v10, %v917_v9  ;;  %v924_v27 = vsub.f32 %v791_v44, %v917_v9  ;;  %v925_v11 = vsub.f32 %v792_v53, %v917_v9 }
 0x11e   : > { %v927_v19 = vmul.f32 %v918_v13, %v1408_v2  ;;  %v928_v21 = vmul.f32 %v919_v14, %v1429_v40  ;;  %v929_v22 = vmul.f32 %v920_v15, %v1417_v25  ;;  %v930_v20 = vmul.f32 %v921_v16, %v1451_v60 }
 0x11f   : > { %v931_v24 = vmul.f32 %v922_v18, %v1458_v6  ;;  %v932_v12 = vmul.f32 %v923_v23, %v1478_v17  ;;  %v926_v29 = vsub.f32 %v793_v55, %v917_v9  ;;  %v933_v40 = vmul.f32 %v924_v27, %v882_v41 }
 0x120   : > { %v937_v26 = vmul.f32 %v927_v19, %v927_v19  ;;  %v938_v33 = vmul.f32 %v928_v21, %v928_v21  ;;  %v939_v54 = vmul.f32 %v929_v22, %v929_v22  ;;  %v940_v32 = vmul.f32 %v930_v20, %v930_v20 }
 0x121   : > { %v941_v35 = vmul.f32 %v931_v24, %v931_v24  ;;  %v934_v31 = vmul.f32 %v925_v11, %v887_v56  ;;  %v942_v10 = vmul.f32 %v932_v12, %v932_v12  ;;  %v935_v36 = vmul.f32 %v926_v29, %v892_v62 }
 0x122   : > { %v946_v28 = vadd.f32 %v938_v33, %v937_v26  ;;  %v943_v37 = vmul.f32 %v933_v40, %v933_v40 }
 0x123   : > { %v944_v39 = vmul.f32 %v934_v31, %v934_v31  ;;  %v945_v42 = vmul.f32 %v935_v36, %v935_v36 }
 0x124   : > { %v947_v2 = vadd.f32 %v946_v28, %v939_v54 }
 0x126   : > { %v948_v25 = vadd.f32 %v947_v2, %v940_v32 }
 0x128   : > { %v949_v60 = vadd.f32 %v948_v25, %v941_v35 }
 0x12a   : > { %v950_v30 = vadd.f32 %v949_v60, %v942_v10 }
 0x12c   : > { %v951_v6 = vadd.f32 %v950_v30, %v943_v37 }
 0x12e   : > { %v952_v44 = vadd.f32 %v951_v6, %v944_v39 }
 0x130   : > { %v953_v45 = vadd.f32 %v952_v44, %v945_v42 }
 0x132   : > { %v954_v46 = vrot.slane %v953_v45, 4 }
 0x134   : > { %v955_v17 = vadd.f32 %v954_v46, %v953_v45 }
 0x136   : > { %v956_v47 = vrot.slane %v955_v17, 2 }
 0x138   : > { %v957_v38 = vadd.f32 %v956_v47, %v955_v17 }
 0x13a   : > { %v958_v48 = vrot.slane %v957_v38, 1 }
 0x13c   : > { %v959_v41 = vadd.f32 %v958_v48, %v957_v38 }
 0x13e   : > { %960 = vst [vmem:[%s241_s11] sm:$0x1] %v959_v41 }
 0x13f PF: > { %s16_s18 = sadd.s32 1, %s1269_s18  }
 0x140   : > { %p13_p4 = scmp.ge.s32.totalorder %s16_s18, 4  }
 0x142   :  { %15 = sbr.rel (!%p13_p4) target bundleno = 1 (0x1), region = 89 }

</bundles_post_ra>
